<compile_context>
chip_gen: v7x
topology: tpu7x:2x2x1
jax: 0.10.0
libtpu: 0.0.40
codegen_flags: <defaults>
</compile_context>

<pallas_src>
import functools

import jax
import jax.numpy as jnp
import numpy as np
from jax.experimental import pallas as pl
from jax.experimental.pallas import tpu as pltpu


def _round_up(x, m):
    return ((x + m - 1) // m) * m


# ----------------------------------------------------------------------------
# Pallas kernel: fused (conv-as-matmul, biases folded) -> relu -> fc1 -> relu -> fc2
# ----------------------------------------------------------------------------
def _agent_kernel(obs_ref, wbig_ref, w1_ref, w2_ref, out_ref):
    # obs carries a trailing ones channel; each weight matrix carries its bias
    # in one extra row plus a 1.0 link that forwards the ones channel through
    # the ReLUs.  bf16 x bf16 matmuls with f32 accumulation on the MXU.
    h0 = jnp.dot(obs_ref[...], wbig_ref[...], preferred_element_type=jnp.float32)
    h0 = jnp.maximum(h0, 0.0).astype(jnp.bfloat16)
    h1 = jnp.dot(h0, w1_ref[...], preferred_element_type=jnp.float32)
    h1 = jnp.maximum(h1, 0.0).astype(jnp.bfloat16)
    out = jnp.dot(h1, w2_ref[...], preferred_element_type=jnp.float32)
    out_ref[...] = out.astype(out_ref.dtype)


@functools.partial(jax.jit, static_argnames=("out_dim", "block_batch"))
def agent_forward_pallas(obs, w_big_p, w1_p, w2_p, *, out_dim, block_batch=128):
    """obs: (B, D) f32 raw observations; w_*_p: padded bf16 weight matrices."""
    B, D = obs.shape
    D_pad, C_pad = w_big_p.shape
    H_pad = w1_p.shape[1]
    O_pad = w2_p.shape[1]

    # Batch tiling: pad B to a multiple of the sublane-aligned block size.
    bb = min(block_batch, _round_up(B, 8))
    bb = _round_up(bb, 8)
    B_pad = _round_up(B, bb)
    grid = (B_pad // bb,)

    # Lane-pad features to D_pad and insert the ones (bias) channel at col D.
    obs_p = jnp.zeros((B_pad, D_pad), jnp.float32)
    obs_p = obs_p.at[:B, :D].set(obs)
    obs_p = obs_p.at[:, D].set(1.0)
    obs_p = obs_p.astype(jnp.bfloat16)

    cost = pl.CostEstimate(
        flops=2 * B_pad * (D_pad * C_pad + C_pad * H_pad + H_pad * O_pad),
        transcendentals=0,
        bytes_accessed=(obs_p.size * 2 + w_big_p.size * 2 + w1_p.size * 2
                        + w2_p.size * 2 + B_pad * O_pad * 4),
    )

    out_p = pl.pallas_call(
        _agent_kernel,
        out_shape=jax.ShapeDtypeStruct((B_pad, O_pad), jnp.float32),
        grid=grid,
        in_specs=[
            pl.BlockSpec((bb, D_pad), lambda i: (i, 0)),      # obs tile per step
            pl.BlockSpec((D_pad, C_pad), lambda i: (0, 0)),   # weights: constant
            pl.BlockSpec((C_pad, H_pad), lambda i: (0, 0)),   #   block index ->
            pl.BlockSpec((H_pad, O_pad), lambda i: (0, 0)),   #   VMEM-resident
        ],
        out_specs=pl.BlockSpec((bb, O_pad), lambda i: (i, 0)),
        compiler_params=pltpu.CompilerParams(
            # batch axis is independent -> megacore sharding on v7x
            dimension_semantics=("parallel",),
            # vmem_limit_bytes: not needed at this size (<1 MiB resident);
            # set explicitly if W_big is scaled up (v6e scoped default 32 MiB).
        ),
        cost_estimate=cost,
    )(obs_p, w_big_p, w1_p, w2_p)

    return out_p[:B, :out_dim]


# ----------------------------------------------------------------------------
# Parameter setup (plain JAX glue): assemble W_big / b_big from conv weights
# ----------------------------------------------------------------------------
def build_big_weight(params, M, L, N, Fn, other_size):
    Mh = M // 2
    ML, NML, NMhL = M * L, N * M * L, N * Mh * L
    D = ML + NML + NMhL + other_size
    C = Fn + 2 * Fn * N + Fn * M + Fn * Mh + Fn

    W_la, W_na, W_ga, W_nt, W_gt, W_oi = (params["W_la"], params["W_na"],
                                          params["W_ga"], params["W_nt"],
                                          params["W_gt"], params["W_oi"])
    b_la, b_na, b_ga, b_nt, b_gt, b_oi = (params["b_la"], params["b_na"],
                                          params["b_ga"], params["b_nt"],
                                          params["b_gt"], params["b_oi"])

    eyeN = jnp.eye(N, dtype=jnp.float32)
    eyeM = jnp.eye(M, dtype=jnp.float32)
    eyeMh = jnp.eye(Mh, dtype=jnp.float32)

    # local_agent_conv: o[b,f] = sum_{l,m} W_la[f,l,0,m] * obs[b, m*L+l]
    blk_local = jnp.transpose(W_la[:, :, 0, :], (2, 1, 0)).reshape(ML, Fn)
    # neigh_agent_conv: col f*N+n <- W_na[f,l,m] at row (n*M+m)*L+l
    blk_na = jnp.einsum("flm,ne->nmlfe", W_na[:, :, 0, :], eyeN).reshape(NML, Fn * N)
    # global_agent_conv: col f*N+n <- W_ga[f,l,m] at row (n*Mh+m)*L+l
    blk_ga = jnp.einsum("flm,ne->nmlfe", W_ga[:, :, 0, :], eyeN).reshape(NMhL, Fn * N)
    # neigh_task_conv: col f*M+m <- W_nt[f,l,n] at row (n*M+m)*L+l
    blk_nt = jnp.einsum("fln,me->nmlfe", W_nt[:, :, :, 0], eyeM).reshape(NML, Fn * M)
    # global_task_conv: col f*Mh+m <- W_gt[f,l,n] at row (n*Mh+m)*L+l
    blk_gt = jnp.einsum("fln,me->nmlfe", W_gt[:, :, :, 0], eyeMh).reshape(NMhL, Fn * Mh)
    blk_oi = W_oi.T  # (other_size, Fn)

    W_big = jnp.zeros((D, C), jnp.float32)
    r1, r2, r3 = ML, ML + NML, ML + NML + NMhL
    c1 = Fn
    c2 = c1 + Fn * N
    c3 = c2 + Fn * N
    c4 = c3 + Fn * M
    c5 = c4 + Fn * Mh
    W_big = W_big.at[0:r1, 0:c1].set(blk_local)
    W_big = W_big.at[r1:r2, c1:c2].set(blk_na)
    W_big = W_big.at[r2:r3, c2:c3].set(blk_ga)
    W_big = W_big.at[r1:r2, c3:c4].set(blk_nt)
    W_big = W_big.at[r2:r3, c4:c5].set(blk_gt)
    W_big = W_big.at[r3:D, c5:C].set(blk_oi)

    b_big = jnp.concatenate([
        b_la,
        jnp.repeat(b_na, N),
        jnp.repeat(b_ga, N),
        jnp.repeat(b_nt, M),
        jnp.repeat(b_gt, Mh),
        b_oi,
    ])
    return W_big, b_big


def build_padded_params(params, M, L, N, Fn, other_size, hidden_dim, out_dim):
    """Pad weights to MXU-friendly tiles and fold all biases via ones channels."""
    W_big, b_big = build_big_weight(params, M, L, N, Fn, other_size)
    D, C = W_big.shape
    H, O = hidden_dim, out_dim

    D_pad = _round_up(D + 1, 256)   # +1: obs ones/bias channel at column D
    C_pad = _round_up(C + 1, 256)   # +1: ones channel in h0 at column C
    H_pad = _round_up(H + 1, 128)   # +1: ones channel in h1 at column H
    O_pad = _round_up(O, 128)       # lane-dense output

    Wb = jnp.zeros((D_pad, C_pad), jnp.float32)
    Wb = Wb.at[:D, :C].set(W_big)
    Wb = Wb.at[D, :C].set(b_big)    # bias row driven by obs ones channel
    Wb = Wb.at[D, C].set(1.0)       # forward ones channel into h0[:, C]

    W1 = params["W_fc1"].T          # (C, H)
    W1p = jnp.zeros((C_pad, H_pad), jnp.float32)
    W1p = W1p.at[:C, :H].set(W1)
    W1p = W1p.at[C, :H].set(params["b_fc1"])
    W1p = W1p.at[C, H].set(1.0)     # forward ones channel into h1[:, H]

    W2 = params["W_fc2"].T          # (H, O)
    W2p = jnp.zeros((H_pad, O_pad), jnp.float32)
    W2p = W2p.at[:H, :O].set(W2)
    W2p = W2p.at[H, :O].set(params["b_fc2"])

    return (Wb.astype(jnp.bfloat16), W1p.astype(jnp.bfloat16),
            W2p.astype(jnp.bfloat16))


# ----------------------------------------------------------------------------
# Plain-JAX reference of the torch forward (f32, for cross-checking the kernel)
# ----------------------------------------------------------------------------
def reference_forward(obs, params, M, L, N, Fn, other_size):
    Mh = M // 2
    ML, NML, NMhL = M * L, N * M * L, N * Mh * L
    B = obs.shape[0]
    relu = lambda x: jnp.maximum(x, 0.0)

    lb = obs[:, :ML].reshape(B, 1, M, L).transpose(0, 3, 1, 2)          # (B,L,1,M)
    nb = obs[:, ML:ML + NML].reshape(B, N, M, L).transpose(0, 3, 1, 2)  # (B,L,N,M)
    gb = obs[:, ML + NML:ML + NML + NMhL].reshape(B, N, Mh, L).transpose(0, 3, 1, 2)
    oi = obs[:, ML + NML + NMhL:]

    la = relu(jnp.einsum("blm,flm->bf", lb[:, :, 0, :], params["W_la"][:, :, 0, :])
              + params["b_la"])                                          # (B,F)
    na = relu(jnp.einsum("blnm,flm->bfn", nb, params["W_na"][:, :, 0, :])
              + params["b_na"][None, :, None]).reshape(B, Fn * N)
    ga = relu(jnp.einsum("blnm,flm->bfn", gb, params["W_ga"][:, :, 0, :])
              + params["b_ga"][None, :, None]).reshape(B, Fn * N)
    nt = relu(jnp.einsum("blnm,fln->bfm", nb, params["W_nt"][:, :, :, 0])
              + params["b_nt"][None, :, None]).reshape(B, Fn * M)
    gt = relu(jnp.einsum("blnm,fln->bfm", gb, params["W_gt"][:, :, :, 0])
              + params["b_gt"][None, :, None]).reshape(B, Fn * Mh)
    of = relu(oi @ params["W_oi"].T + params["b_oi"])

    comb = jnp.concatenate([la, na, ga, nt, gt, of], axis=1)
    h = relu(comb @ params["W_fc1"].T + params["b_fc1"])
    return h @ params["W_fc2"].T + params["b_fc2"]


# ----------------------------------------------------------------------------
# main
# ----------------------------------------------------------------------------
if __name__ == "__main__":
    # Small, module-consistent config
    M, L, N = 8, 3, 4
    num_filters, hidden_dim = 8, 32
    other_size = 10
    Mh = M // 2
    input_shape = M * L + N * M * L + N * Mh * L + other_size       # 178
    num_comb = num_filters * (2 + 2 * N + M + Mh)                    # 176
    out_dim = M + 1                                                  # 9
    B = 40                                                           # batched call

    key = jax.random.PRNGKey(0)
    ks = jax.random.split(key, 20)

    def uinit(k, shape, fan_in):
        bound = 1.0 / np.sqrt(fan_in)
        return jax.random.uniform(k, shape, jnp.float32, -bound, bound)

    params = {
        "W_la": uinit(ks[0], (num_filters, L, 1, M), L * M),
        "b_la": uinit(ks[1], (num_filters,), L * M),
        "W_na": uinit(ks[2], (num_filters, L, 1, M), L * M),
        "b_na": uinit(ks[3], (num_filters,), L * M),
        "W_ga": uinit(ks[4], (num_filters, L, 1, Mh), L * Mh),
        "b_ga": uinit(ks[5], (num_filters,), L * Mh),
        "W_nt": uinit(ks[6], (num_filters, L, N, 1), L * N),
        "b_nt": uinit(ks[7], (num_filters,), L * N),
        "W_gt": uinit(ks[8], (num_filters, L, N, 1), L * N),
        "b_gt": uinit(ks[9], (num_filters,), L * N),
        "W_oi": uinit(ks[10], (num_filters, other_size), other_size),
        "b_oi": uinit(ks[11], (num_filters,), other_size),
        "W_fc1": uinit(ks[12], (hidden_dim, num_comb), num_comb),
        "b_fc1": uinit(ks[13], (hidden_dim,), num_comb),
        "W_fc2": uinit(ks[14], (out_dim, hidden_dim), hidden_dim),
        "b_fc2": uinit(ks[15], (out_dim,), hidden_dim),
    }

    obs = jax.random.normal(ks[16], (B, input_shape), jnp.float32)

    # Glue: padded, bias-folded, bf16 weights (done once; reused across calls).
    Wb_p, W1_p, W2_p = build_padded_params(params, M, L, N, num_filters,
                                           other_size, hidden_dim, out_dim)

    # block_batch=16 -> batch padded 40 -> 48, grid of 3 pipelined steps with
    # the weights DMA'd once and kept VMEM-resident.
    out = agent_forward_pallas(obs, Wb_p, W1_p, W2_p,
                               out_dim=out_dim, block_batch=16)
    out = jax.block_until_ready(out)

    ref = reference_forward(obs, params, M, L, N, num_filters, other_size)
    ref = jax.block_until_ready(ref)

    assert out.shape == (B, out_dim), out.shape
    if not np.allclose(np.asarray(out), np.asarray(ref), rtol=2e-2, atol=2e-2):
        err = float(np.max(np.abs(np.asarray(out) - np.asarray(ref))))
        raise AssertionError(f"Pallas kernel output mismatch vs reference "
                             f"(max abs err {err:.3e})")

    print("KERNEL_OK")
</pallas_src>

<mosaic_0001>
module attributes {stable_mosaic.version = 11 : i64} {
  func.func @_agent_kernel(%arg0: i32, %arg1: memref<16x256xbf16, #tpu.memory_space<vmem>>, %arg2: memref<256x256xbf16, #tpu.memory_space<vmem>>, %arg3: memref<256x128xbf16, #tpu.memory_space<vmem>>, %arg4: memref<128x128xbf16, #tpu.memory_space<vmem>>, %arg5: memref<16x128xf32, #tpu.memory_space<vmem>>) attributes {dimension_semantics = [#tpu.dimension_semantics<parallel>], iteration_bounds = array<i64: 3>, scalar_prefetch = 0 : i64, scratch_operands = 0 : i64, tpu.core_type = #tpu.core_type<tc>, window_params = [{transform_indices = @transform_0, window_bounds = array<i64: 16, 256>}, {pipeline_mode = #tpu.pipeline_mode<synchronous>, transform_indices = @transform_1, window_bounds = array<i64: 256, 256>}, {pipeline_mode = #tpu.pipeline_mode<synchronous>, transform_indices = @transform_2, window_bounds = array<i64: 256, 128>}, {pipeline_mode = #tpu.pipeline_mode<synchronous>, transform_indices = @transform_3, window_bounds = array<i64: 128, 128>}, {transform_indices = @transform_4, window_bounds = array<i64: 16, 128>}]} {
    %c0 = arith.constant 0 : index
    %c0_0 = arith.constant 0 : index
    %0 = vector.load %arg1[%c0, %c0_0] : memref<16x256xbf16, #tpu.memory_space<vmem>>, vector<16x256xbf16>
    %c0_1 = arith.constant 0 : index
    %c0_2 = arith.constant 0 : index
    %1 = vector.load %arg2[%c0_1, %c0_2] : memref<256x256xbf16, #tpu.memory_space<vmem>>, vector<256x256xbf16>
    %cst = arith.constant dense<0.000000e+00> : vector<16x256xf32>
    %2 = tpu.matmul %0, %1, %cst {dimension_numbers = #tpu.dot_dimension_numbers<[1], [0], [0], [1], [0, 0, 1, 1], [], []>} : vector<16x256xbf16>, vector<256x256xbf16>, vector<16x256xf32> -> vector<16x256xf32>
    %cst_3 = arith.constant 0.000000e+00 : f32
    %3 = vector.broadcast %cst_3 : f32 to vector<16x256xf32>
    %4 = arith.maximumf %2, %3 : vector<16x256xf32>
    %5 = arith.truncf %4 : vector<16x256xf32> to vector<16x256xbf16>
    %c0_4 = arith.constant 0 : index
    %c0_5 = arith.constant 0 : index
    %6 = vector.load %arg3[%c0_4, %c0_5] : memref<256x128xbf16, #tpu.memory_space<vmem>>, vector<256x128xbf16>
    %cst_6 = arith.constant dense<0.000000e+00> : vector<16x128xf32>
    %7 = tpu.matmul %5, %6, %cst_6 {dimension_numbers = #tpu.dot_dimension_numbers<[1], [0], [0], [1], [0, 0, 1, 1], [], []>} : vector<16x256xbf16>, vector<256x128xbf16>, vector<16x128xf32> -> vector<16x128xf32>
    %cst_7 = arith.constant 0.000000e+00 : f32
    %8 = vector.broadcast %cst_7 : f32 to vector<16x128xf32>
    %9 = arith.maximumf %7, %8 : vector<16x128xf32>
    %10 = arith.truncf %9 : vector<16x128xf32> to vector<16x128xbf16>
    %c0_8 = arith.constant 0 : index
    %c0_9 = arith.constant 0 : index
    %11 = vector.load %arg4[%c0_8, %c0_9] : memref<128x128xbf16, #tpu.memory_space<vmem>>, vector<128x128xbf16>
    %cst_10 = arith.constant dense<0.000000e+00> : vector<16x128xf32>
    %12 = tpu.matmul %10, %11, %cst_10 {dimension_numbers = #tpu.dot_dimension_numbers<[1], [0], [0], [1], [0, 0, 1, 1], [], []>} : vector<16x128xbf16>, vector<128x128xbf16>, vector<16x128xf32> -> vector<16x128xf32>
    %c0_11 = arith.constant 0 : index
    %c0_12 = arith.constant 0 : index
    %13 = vector.load %arg5[%c0_11, %c0_12] : memref<16x128xf32, #tpu.memory_space<vmem>>, vector<16x128xf32>
    tpu.vector_store %arg5[%c0_11, %c0_12], %12 {strides = array<i32>} : memref<16x128xf32, #tpu.memory_space<vmem>>, vector<16x128xf32>,
    return
  }
  func.func @transform_0(%arg0: i32) -> (i32, i32) {
    %c0_i32 = arith.constant 0 : i32
    %c0_i32_0 = arith.constant 0 : i32
    return %arg0, %c0_i32 : i32, i32
  }
  func.func @transform_1(%arg0: i32) -> (i32, i32) {
    %c0_i32 = arith.constant 0 : i32
    %c0_i32_0 = arith.constant 0 : i32
    %c0_i32_1 = arith.constant 0 : i32
    return %c0_i32, %c0_i32_0 : i32, i32
  }
  func.func @transform_2(%arg0: i32) -> (i32, i32) {
    %c0_i32 = arith.constant 0 : i32
    %c0_i32_0 = arith.constant 0 : i32
    %c0_i32_1 = arith.constant 0 : i32
    return %c0_i32, %c0_i32_0 : i32, i32
  }
  func.func @transform_3(%arg0: i32) -> (i32, i32) {
    %c0_i32 = arith.constant 0 : i32
    %c0_i32_0 = arith.constant 0 : i32
    %c0_i32_1 = arith.constant 0 : i32
    return %c0_i32, %c0_i32_0 : i32, i32
  }
  func.func @transform_4(%arg0: i32) -> (i32, i32) {
    %c0_i32 = arith.constant 0 : i32
    %c0_i32_0 = arith.constant 0 : i32
    return %arg0, %c0_i32 : i32, i32
  }
}

</mosaic_0001>

<bundles_post_ra>
// kernel: agent_forward_pallas.1
= control target key start
LH: loop header
LB: loop body
LE: loop exit
PB: predicated region body
PF: predicated region fallthrough
CT: control target
= control target key end

     0   :  { %9 = vsyncpa [#allocation3], 0  ;;  %s1112_s15 = smov 0   ;;  %s1254_s0 = inlined_call_operand.vmem [shape: bf16[48,256], index: 0, kind: input, shape index: {}]   ;;  %s1255_s1 = inlined_call_operand.hbm [shape: bf16[256,256], index: 1, kind: input, shape index: {}]   ;;  %s1256_s2 = inlined_call_operand.vmem [shape: bf16[256,128], index: 2, kind: input, shape index: {}]   ;;  %s1257_s3 = inlined_call_operand.vmem [shape: bf16[128,128], index: 3, kind: input, shape index: {}]   ;;  %s1258_s4 = inlined_call_operand.vmem [shape: f32[48,128], index: 4, kind: output, shape index: {}]  }
   0x1 LB: > { %s820_s16 = sadd.s32 4294967295, %s1080_s15   ;;  %p822_p0 = scmp.ge.s32.totalorder %s1080_s15, 1  ;;  %s1080_s15 = sphi %s1112_s15, %s15_s15  }
   0x2   : > { %p135_p1 = scmp.lt.s32.totalorder %s1080_s15, 4  ;;  %s1082_s17 = smov [#allocation2]  }
   0x3   : > { %s147_s18 = sshll.u32 %s1082_s17, 4  ;;  %p1126_p3 = scmp.eq.s32.totalorder %s820_s16, 0  ;;  %s148_s18 = int_to_ptr.vmem [resolvable:$true] %s147_s18 }
   0x4   : > { %p1120_p2 = pnand %p822_p0, %p135_p1  ;;  %s1042_s24 = scalar_lea.hbm %s1255_s1, 4096 }
   0x5   : > { %s1263_s20 = scalar_select %p1126_p3, 1, 0 }
   0x6   : > { %s1262_s19 = scalar_select %p1120_p2, 1, 0 }
   0x7   : > { %p948_p4 = pneg %p1120_p2  ;;  %p1043_p6 = scmp.ne.s32.totalorder %s1255_s1, %s1042_s24 }
   0x8   : > { %p1049_p10 = scmp.lt.u32.totalorder %s1042_s24, %s1255_s1 }
   0x9   : > { %p1134_p5 = pnand %p1126_p3, %p948_p4 }
   0xb   : > { %p1044_p7 = pneg %p1134_p5 }
   0xd   : > { %p1045_p8 = pnand %p1044_p7, %p1043_p6 }
   0xf   : > { %p1046_p9 = pneg %p1045_p8 }
  0x11   : > { %p1051_p11 = pnand %p1049_p10, %p1046_p9 }
  0x13   : > { %1054 = shalt.err (!%p1051_p11)
}
  0x14   : > { %s1055_s29 = scalar_lea.vmem %s148_s18, 4096  ;;  %p1063_p1 = scmp.lt.s32.totalorder %s148_s18, %s148_s18 }
  0x15   : > { %p1056_p12 = scmp.ne.s32.totalorder %s148_s18, %s1055_s29  ;;  %p1064_p4 = scmp.lt.s32.totalorder %s1055_s29, %s1055_s29 }
  0x17   : > { %p1058_p13 = pnand %p1056_p12, %p1044_p7  ;;  %p1065_p3 = por %p1064_p4, %p1063_p1 }
  0x19   : > { %p1059_p0 = pneg %p1058_p13 }
  0x1b   : > { %p1066_p2 = pnand %p1065_p3, %p1059_p0 }
  0x1d   : > { %1069 = shalt.err (!%p1066_p2)
}
  0x1e   : > { %s1083_s30 = smov 128   ;;  %s1084_s5 = smov 8  }
  0x1f   : > { %951 = dma.hbm_to_vmem [thread:$0]  (!%p1134_p5), %s1255_s1, 4096, %s148_s18, [#allocation3], %s1083_s30, %s1083_s30, %s1084_s5  }
  0x20   : > { %p1265_p6 = scmp.ne.s32.totalorder %s1262_s19, 0 }
  0x21   : > { %p1266_p8 = scmp.ne.s32.totalorder (!%p1265_p6), %s1263_s20, 0 }
  0x22   : > { %179 = sbr.rel (%p1265_p6) target bundleno = 763 (0x2fb), region = 36 }
  0x29   : > { %1075 = dma.done.wait (%p1266_p8), [#allocation3], 4096  }
  0x2a   : > { %1077 = vsyncadd (%p1266_p8), [#allocation3], 4294963200  ;;  %v967_v0 = vld [vmem:[#allocation2 + $0x4] ss:$8 sps:$4 sm:$0xff]   ;;  %v969_v1 = vld [vmem:[#allocation2] ss:$8 sps:$4 sm:$0xff]  }
  0x2b   : > { %424 = vmatprep.subr.bf16.mxu0 %v967_v0  ;;  %v970_v2 = vld [vmem:[#allocation2 + $0x14] ss:$8 sps:$4 sm:$0xff]   ;;  %v972_v3 = vld [vmem:[#allocation2 + $0x10] ss:$8 sps:$4 sm:$0xff]   ;;  %v973_v4 = vld [vmem:[#allocation2 + $0x24] ss:$8 sps:$4 sm:$0xff]  }
  0x2c   : > { %425 = vmatpush1.bf16.msra.mxu0 %v969_v1  ;;  %s827_s8 = sshll.u32 %s820_s16, 1  ;;  %v975_v5 = vld [vmem:[#allocation2 + $0x20] ss:$8 sps:$4 sm:$0xff]   ;;  %v976_v6 = vld [vmem:[#allocation2 + $0x34] ss:$8 sps:$4 sm:$0xff]   ;;  %v1085_v50 = vmov 0.0  }
  0x2d   : > { %426 = vmatprep.subr.bf16.mxu0 %v970_v2  ;;  %p207_p2 = scmp.lt.s32.totalorder %s827_s8, 5  ;;  %v978_v7 = vld [vmem:[#allocation2 + $0x30] ss:$8 sps:$4 sm:$0xff]   ;;  %v979_v8 = vld [vmem:[#allocation2 + $0x44] ss:$8 sps:$4 sm:$0xff]   ;;  %vm1086_vm0 = vmmov 0  }
  0x2e   : > { %v981_v9 = vld [vmem:[#allocation2 + $0x40] ss:$8 sps:$4 sm:$0xff]   ;;  %v982_v10 = vld [vmem:[#allocation2 + $0x54] ss:$8 sps:$4 sm:$0xff]   ;;  %v984_v11 = vld [vmem:[#allocation2 + $0x50] ss:$8 sps:$4 sm:$0xff]  }
  0x2f   : > { %s1268_s8 = smov (!%p207_p2, %s827_s8), 5  ;;  %v985_v12 = vld [vmem:[#allocation2 + $0x64] ss:$8 sps:$4 sm:$0xff]   ;;  %v987_v13 = vld [vmem:[#allocation2 + $0x60] ss:$8 sps:$4 sm:$0xff]   ;;  %v1022_v21 = vld [vmem:[%s1256_s2 + $0x50] sm:$0xff]  }
  0x30   : > { %427 = vmatpush1.bf16.msra.mxu0 %v972_v3  ;;  %s892_s9 = sshll.u32 %s1268_s8, 3  ;;  %v988_v14 = vld [vmem:[#allocation2 + $0x74] ss:$8 sps:$4 sm:$0xff]   ;;  %v1018_v16 = vld [vmem:[%s1256_s2 + $0x40] sm:$0xff]   ;;  %v990_v18 = vld [vmem:[#allocation2 + $0x70] ss:$8 sps:$4 sm:$0xff]  }
  0x31   : > { %428 = vmatprep.subr.bf16.mxu0 %v973_v4  ;;  %s1170_s12 = scalar_lea.vmem %s1254_s0, %s892_s9  ;;  %v1019_v17 = vld [vmem:[%s1256_s2] sm:$0xff]   ;;  %893 = vmatprep.subr.bf16.mxu1 %v1018_v16  ;;  %v1020_v19 = vld [vmem:[%s1256_s2 + $0x48] sm:$0xff]   ;;  %v1023_v24 = vld [vmem:[%s1256_s2 + $0x10] sm:$0xff]   ;;  %s217_s19 = scalar_lea.vmem %s1258_s4, %s892_s9 }
  0x32   : > { %v1017_v15 = vld [vmem:[%s1170_s12 + $0x4] ss:$8 sps:$4 sm:$0xff]   ;;  %894 = vmatpush3.bf16.msra.mxu1 %v1019_v17  ;;  %v993_v23 = vld [vmem:[#allocation2 + $0x80] ss:$8 sps:$4 sm:$0xff]   ;;  %v1024_v25 = vld [vmem:[%s1256_s2 + $0x58] sm:$0xff]  }
  0x33   : > { %456 = vmatprep.mubr.bf16.mxu0 %v1017_v15  ;;  %v1021_v20 = vld [vmem:[%s1256_s2 + $0x8] sm:$0xff]   ;;  %895 = vmatprep.subr.bf16.mxu1 %v1020_v19  ;;  %v994_v26 = vld [vmem:[#allocation2 + $0x94] ss:$8 sps:$4 sm:$0xff]   ;;  %v996_v27 = vld [vmem:[#allocation2 + $0x90] ss:$8 sps:$4 sm:$0xff]  }
  0x34   : > { %429 = vmatpush1.bf16.msra.mxu0 %v975_v5  ;;  %v991_v22 = vld [vmem:[#allocation2 + $0x84] ss:$8 sps:$4 sm:$0xff]   ;;  %v1025_v28 = vld [vmem:[%s1256_s2 + $0x18] sm:$0xff]   ;;  %v999_v32 = vld [vmem:[#allocation2 + $0xa0] ss:$8 sps:$4 sm:$0xff]  }
  0x35   : > { %430 = vmatprep.subr.bf16.mxu0 %v976_v6  ;;  %v997_v29 = vld [vmem:[#allocation2 + $0xa4] ss:$8 sps:$4 sm:$0xff]   ;;  %v1000_v34 = vld [vmem:[#allocation2 + $0xb4] ss:$8 sps:$4 sm:$0xff]   ;;  %v1002_v36 = vld [vmem:[#allocation2 + $0xb0] ss:$8 sps:$4 sm:$0xff]  }
  0x36   : > { %896 = vmatpush3.bf16.msra.mxu1 %v1021_v20  ;;  %v1026_v30 = vld [vmem:[%s1256_s2 + $0x60] sm:$0xff]   ;;  %v1028_v33 = vld [vmem:[%s1256_s2 + $0x68] sm:$0xff]   ;;  %v1006_v39 = vld [vmem:[#allocation2 + $0xd4] ss:$8 sps:$4 sm:$0xff]  }
  0x37   : > { %897 = vmatprep.subr.bf16.mxu1 %v1022_v21  ;;  %v1027_v31 = vld [vmem:[%s1256_s2 + $0x20] sm:$0xff]   ;;  %v1029_v35 = vld [vmem:[%s1256_s2 + $0x28] sm:$0xff]   ;;  %v1008_v40 = vld [vmem:[#allocation2 + $0xd0] ss:$8 sps:$4 sm:$0xff]  }
  0x38   : > { %431 = vmatpush1.bf16.msra.mxu0 %v978_v7  ;;  %v1003_v37 = vld [vmem:[#allocation2 + $0xc4] ss:$8 sps:$4 sm:$0xff]   ;;  %v1005_v38 = vld [vmem:[#allocation2 + $0xc0] ss:$8 sps:$4 sm:$0xff]   ;;  %v1012_v43 = vld [vmem:[#allocation2 + $0xf4] ss:$8 sps:$4 sm:$0xff]  }
  0x39   : > { %432 = vmatprep.subr.bf16.mxu0 %v979_v8  ;;  %v1009_v41 = vld [vmem:[#allocation2 + $0xe4] ss:$8 sps:$4 sm:$0xff]   ;;  %v1011_v42 = vld [vmem:[#allocation2 + $0xe0] ss:$8 sps:$4 sm:$0xff]   ;;  %v1014_v44 = vld [vmem:[#allocation2 + $0xf0] ss:$8 sps:$4 sm:$0xff]  }
  0x3a   : > { %898 = vmatpush3.bf16.msra.mxu1 %v1023_v24  ;;  %v1015_v45 = vld [vmem:[%s1170_s12] ss:$8 sps:$4 sm:$0xff]   ;;  %v1030_v46 = vld [vmem:[%s1256_s2 + $0x70] sm:$0xff]   ;;  %v1032_v48 = vld [vmem:[%s1256_s2 + $0x78] sm:$0xff]  }
  0x3b   : > { %899 = vmatprep.subr.bf16.mxu1 %v1024_v25  ;;  %v1031_v47 = vld [vmem:[%s1256_s2 + $0x30] sm:$0xff]   ;;  %v1033_v49 = vld [vmem:[%s1256_s2 + $0x38] sm:$0xff]   ;;  %v1034_v61 = vld [vmem:[%s1257_s3] sm:$0xff]  }
  0x3c   : > { %433 = vmatpush1.bf16.msra.mxu0 %v981_v9  ;;  %v1035_v62 = vld [vmem:[%s1257_s3 + $0x8] sm:$0xff]   ;;  %v1036_v63 = vld [vmem:[%s1257_s3 + $0x10] sm:$0xff]   ;;  %v1037_v0 = vld [vmem:[%s1257_s3 + $0x18] sm:$0xff]  }
  0x3d   : > { %434 = vmatprep.subr.bf16.mxu0 %v982_v10  ;;  %v1038_v1 = vld [vmem:[%s1257_s3 + $0x20] sm:$0xff]   ;;  %v1039_v2 = vld [vmem:[%s1257_s3 + $0x28] sm:$0xff]   ;;  %v1040_v3 = vld [vmem:[%s1257_s3 + $0x30] sm:$0xff]  }
  0x3e   : > { %900 = vmatpush3.bf16.msra.mxu1 %v1025_v28  ;;  %v1041_v4 = vld [vmem:[%s1257_s3 + $0x38] sm:$0xff]  }
  0x3f   : > { %901 = vmatprep.subr.bf16.mxu1 %v1026_v30 }
  0x40   : > { %435 = vmatpush1.bf16.msra.mxu0 %v984_v11 }
  0x41   : > { %436 = vmatprep.subr.bf16.mxu0 %v985_v12 }
  0x42   : > { %902 = vmatpush3.bf16.msra.mxu1 %v1027_v31 }
  0x43   : > { %903 = vmatprep.subr.bf16.mxu1 %v1028_v33 }
  0x44   : > { %437 = vmatpush1.bf16.msra.mxu0 %v987_v13 }
  0x45   : > { %438 = vmatprep.subr.bf16.mxu0 %v988_v14 }
  0x46   : > { %904 = vmatpush3.bf16.msra.mxu1 %v1029_v35 }
  0x47   : > { %905 = vmatprep.subr.bf16.mxu1 %v1030_v46 }
  0x48   : > { %439 = vmatpush1.bf16.msra.mxu0 %v990_v18 }
  0x49   : > { %440 = vmatprep.subr.bf16.mxu0 %v991_v22 }
  0x4a   : > { %906 = vmatpush3.bf16.msra.mxu1 %v1031_v47 }
  0x4b   : > { %907 = vmatprep.subr.bf16.mxu1 %v1032_v48 }
  0x4c   : > { %441 = vmatpush1.bf16.msra.mxu0 %v993_v23 }
  0x4d   : > { %442 = vmatprep.subr.bf16.mxu0 %v994_v26 }
  0x4e   : > { %908 = vmatpush3.bf16.msra.mxu1 %v1033_v49 }
  0x4f   : > { %924 = vmatprep.subr.bf16.mxu1 %v1085_v50 }
  0x50   : > { %443 = vmatpush1.bf16.msra.mxu0 %v996_v27 }
  0x51   : > { %444 = vmatprep.subr.bf16.mxu0 %v997_v29 }
  0x54   : > { %445 = vmatpush1.bf16.msra.mxu0 %v999_v32 }
  0x55   : > { %446 = vmatprep.subr.bf16.mxu0 %v1000_v34 }
  0x58   : > { %447 = vmatpush1.bf16.msra.mxu0 %v1002_v36 }
  0x59   : > { %448 = vmatprep.subr.bf16.mxu0 %v1003_v37 }
  0x5c   : > { %449 = vmatpush1.bf16.msra.mxu0 %v1005_v38 }
  0x5d   : > { %450 = vmatprep.subr.bf16.mxu0 %v1006_v39 }
  0x60   : > { %451 = vmatpush1.bf16.msra.mxu0 %v1008_v40 }
  0x61   : > { %452 = vmatprep.subr.bf16.mxu0 %v1009_v41 }
  0x64   : > { %453 = vmatpush1.bf16.msra.mxu0 %v1011_v42 }
  0x65   : > { %454 = vmatprep.subr.bf16.mxu0 %v1012_v43 }
  0x68   : > { %455 = vmatpush1.bf16.msra.mxu0 %v1014_v44 }
  0x6b   : > { %457 = vmatmul.mubr.bf16.vlgmr.msra.gmra.mrb[0].mxu0 %v1015_v45 }
 0x13e   : > { %v458_v51 = vpop.f32.mrb[0].mxu0 }
 0x13f   : > { %v460_v52 = vpop.f32.mrb[1].mxu0  ;;  %v467_v54 = vmax.f32 %v458_v51, 0.0 }
 0x140   : > { %v462_v53 = vpop.f32.mrb[2].mxu0  ;;  %v468_v57 = vmax.f32 %v460_v52, 0.0 }
 0x141   : > { %v469_v55 = vmax.f32 %v462_v53, 0.0  ;;  %v464_v56 = vpop.f32.mrb[3].mxu0 }
 0x142   : > { %v470_v58 = vmax.f32 %v464_v56, 0.0 }
 0x143   : > { %v471_v59 = vpack.c.bf16 %v469_v55, %v467_v54 }
 0x144   : > { %v472_v60 = vpack.c.bf16 %v470_v58, %v468_v57 }
 0x146   : > { %633 = vmatprep.mubr.bf16.mxu1 %v472_v60 }
 0x147   : > { %634 = vmatmul.mubr.bf16.vlgmr.msra.gmra.mrb[0].mxu1 %v471_v59 }
 0x148   : > { %925 = vmatpush3.bf16.msra.mxu1 %v1034_v61  ;;  %940 = vmatprep.mubr.msk.bf16.mxu1 %vm1086_vm0, %v1085_v50 }
 0x149   : > { %926 = vmatprep.subr.bf16.mxu1 %v1085_v50 }
 0x14c   : > { %927 = vmatpush3.bf16.msra.mxu1 %v1035_v62 }
 0x14d   : > { %928 = vmatprep.subr.bf16.mxu1 %v1085_v50 }
 0x150   : > { %929 = vmatpush3.bf16.msra.mxu1 %v1036_v63 }
 0x151   : > { %930 = vmatprep.subr.bf16.mxu1 %v1085_v50 }
 0x154   : > { %931 = vmatpush3.bf16.msra.mxu1 %v1037_v0 }
 0x155   : > { %932 = vmatprep.subr.bf16.mxu1 %v1085_v50 }
 0x158   : > { %933 = vmatpush3.bf16.msra.mxu1 %v1038_v1 }
 0x159   : > { %934 = vmatprep.subr.bf16.mxu1 %v1085_v50 }
 0x15c   : > { %935 = vmatpush3.bf16.msra.mxu1 %v1039_v2 }
 0x15d   : > { %936 = vmatprep.subr.bf16.mxu1 %v1085_v50 }
 0x160   : > { %937 = vmatpush3.bf16.msra.mxu1 %v1040_v3 }
 0x161   : > { %938 = vmatprep.subr.bf16.mxu1 %v1085_v50 }
 0x164   : > { %939 = vmatpush3.bf16.msra.mxu1 %v1041_v4 }
 0x21a   : > { %v909_v5 = vpop.f32.mrb[0].mxu1 }
 0x21b   : > { %v910_v6 = vpop.f32.mrb[1].mxu1 }
 0x21c   : > { %v911_v7 = vadd.f32 %v910_v6, %v909_v5  ;;  %v912_v8 = vpop.f32.mrb[2].mxu1 }
 0x21d   : > { %v913_v9 = vpop.f32.mrb[3].mxu1 }
 0x21e   : > { %v914_v10 = vadd.f32 %v913_v9, %v912_v8  ;;  %v642_v11 = vmax.f32 %v911_v7, 0.0 }
 0x220   : > { %v643_v12 = vmax.f32 %v914_v10, 0.0 }
 0x222   : > { %v644_v13 = vpack.c.bf16 %v643_v12, %v642_v11 }
 0x224   : > { %941 = vmatmul.mubr.bf16.vlgmr.msra.gmra.mrb[4].mxu1 %v644_v13 }
 0x2f7   : > { %v743_v14 = vpop.f32.mrb[4].mxu1 }
 0x2f8   : > { %750 = vst [vmem:[%s217_s19] sm:$0xff] %v743_v14  ;;  %v942_v15 = vpop.f32.mrb[5].mxu1 }
 0x2f9   : > { %v746_v16 = vpop.f32.mrb[6].mxu1 }
 0x2fa   : > { %751 = vst [vmem:[%s217_s19 + $0x8] sm:$0xff] %v746_v16  ;;  %v943_v17 = vpop.f32.mrb[7].mxu1 }
 0x2fb PF: > { %s15_s15 = sadd.s32 1, %s1080_s15  }
 0x2fc   : > { %p12_p3 = scmp.ge.s32.totalorder %s15_s15, 5  }
 0x2fe   :  { %14 = sbr.rel (!%p12_p3) target bundleno = 1 (0x1), region = 71 }
 0x305   :  { %774 = vsyncpa [#allocation3], 1 }
 0x306   :  { %776 = vsyncpa [#allocation3 + $0x1], 1 }

</bundles_post_ra>
